<compile_context>
chip_gen: v5e
topology: v5e:2x2
jax: 0.10.0
libtpu: 0.0.40
codegen_flags: <defaults>
</compile_context>

<pallas_src>
import functools

import jax
import jax.numpy as jnp
from jax.experimental import pallas as pl
from jax.experimental.pallas import tpu as pltpu


# ----------------------------------------------------------------------------
# Pallas kernel: Nb images per grid step, fully fused SE block
# ----------------------------------------------------------------------------
def _se_block_kernel(x_ref, w1t_ref, b1_ref, w2t_ref, b2_ref, o_ref, *, inv_hw):
    """x_ref/o_ref: (Nb, C, HW)   -- HW (full spatial extent) on the lane axis
    w1t_ref: (C, Cr)  b1_ref: (1, Cr)    -- fc1, weight pre-transposed
    w2t_ref: (Cr, C)  b2_ref: (1, C)     -- fc2, weight pre-transposed
    """
    x = x_ref[...]                                            # (Nb, C, HW) f32

    # Global average pool over spatial (lane reduce), divide by the real H*W
    # (compile-time constant).
    pooled = jnp.sum(x, axis=-1) * inv_hw                     # (Nb, C)

    # fc1 + ReLU :  h = pooled @ W1^T + b1
    h = jnp.dot(pooled, w1t_ref[...],
                preferred_element_type=jnp.float32) + b1_ref[...]   # (Nb, Cr)
    h = jnp.maximum(h, 0.0)

    # fc2 + sigmoid :  g = sigmoid(h @ W2^T + b2)   (EUP-friendly form)
    g = jnp.dot(h, w2t_ref[...],
                preferred_element_type=jnp.float32) + b2_ref[...]   # (Nb, C)
    g = pl.reciprocal(1.0 + jnp.exp(-g), approx=True)

    # Channel-wise re-scale; g broadcasts along the (lane) spatial axis.
    o_ref[...] = (x * g[:, :, None]).astype(o_ref.dtype)


def se_block(x_nchw, fc1_w, fc1_b, fc2_w, fc2_b,
             *, target_tile_bytes=2 * 1024 * 1024):
    """SEBlock.forward.  x: (N, C, H, W); fc weights in PyTorch Linear layout."""
    N, C, H, W = x_nchw.shape
    Cr = fc1_w.shape[0]
    HW = H * W

    # Free view of contiguous NCHW -> (N, C, HW).  No pad, no extra HBM copy.
    x = x_nchw.reshape(N, C, HW)

    # --- pick Nb (images per grid step) -----------------------------------
    per_img_bytes = C * HW * x.dtype.itemsize
    nb_cap = max(1, target_tile_bytes // per_img_bytes)       # ~1-2 MiB tiles
    nb_cap = min(nb_cap, max(1, N // 2))                      # keep grid >= 2 if N >= 2
    nb_cap = min(nb_cap, N)
    Nb = max(d for d in range(1, nb_cap + 1) if N % d == 0)   # Nb divides N
    grid_n = N // Nb

    tile_bytes = Nb * per_img_bytes
    # In + out double-buffered tiles + weights + margin; clamp for v7x (64 MiB).
    vmem_limit = int(min(48 << 20, max(32 << 20, 6 * tile_bytes)))

    out = pl.pallas_call(
        functools.partial(_se_block_kernel, inv_hw=1.0 / HW),
        out_shape=jax.ShapeDtypeStruct((N, C, HW), x.dtype),
        grid=(grid_n,),
        in_specs=[
            pl.BlockSpec((Nb, C, HW), lambda n: (n, 0, 0)),
            pl.BlockSpec((C, Cr), lambda n: (0, 0)),
            pl.BlockSpec((1, Cr), lambda n: (0, 0)),
            pl.BlockSpec((Cr, C), lambda n: (0, 0)),
            pl.BlockSpec((1, C), lambda n: (0, 0)),
        ],
        out_specs=pl.BlockSpec((Nb, C, HW), lambda n: (n, 0, 0)),
        compiler_params=pltpu.CompilerParams(
            dimension_semantics=("parallel",),
            vmem_limit_bytes=vmem_limit,
        ),
    )(x, fc1_w.T, fc1_b.reshape(1, Cr), fc2_w.T, fc2_b.reshape(1, C))

    return out.reshape(N, C, H, W)


# ----------------------------------------------------------------------------
# Pure-JAX reference (mirrors the PyTorch SEBlock.forward)
# ----------------------------------------------------------------------------
def ref_forward(x, fc1_w, fc1_b, fc2_w, fc2_b):
    pooled = jnp.mean(x, axis=(2, 3))                        # (N, C)
    h = jax.nn.relu(pooled @ fc1_w.T + fc1_b)                # (N, Cr)
    g = jax.nn.sigmoid(h @ fc2_w.T + fc2_b)                  # (N, C)
    return x * g[:, :, None, None]


if __name__ == "__main__":
    key = jax.random.PRNGKey(0)
    kx, k1, k2, k3, k4 = jax.random.split(key, 5)

    # SE-ResNet style config: C=64, r=16  ->  Cr=4 ; X is NCHW.
    N, C, H, W, r = 2, 64, 16, 16, 16
    Cr = C // r

    x = jax.random.normal(kx, (N, C, H, W), jnp.float32)
    fc1_w = 0.2 * jax.random.normal(k1, (Cr, C), jnp.float32)   # fc1.weight
    fc1_b = 0.1 * jax.random.normal(k2, (Cr,), jnp.float32)     # fc1.bias
    fc2_w = 0.2 * jax.random.normal(k3, (C, Cr), jnp.float32)   # fc2.weight
    fc2_b = 0.1 * jax.random.normal(k4, (C,), jnp.float32)      # fc2.bias

    out = jax.block_until_ready(se_block(x, fc1_w, fc1_b, fc2_w, fc2_b))
    ref = ref_forward(x, fc1_w, fc1_b, fc2_w, fc2_b)

    assert out.shape == (N, C, H, W), out.shape
    max_err = float(jnp.max(jnp.abs(out - ref)))
    assert jnp.allclose(out, ref, atol=1e-2, rtol=1e-2), max_err
    print("KERNEL_OK")
</pallas_src>

<mosaic_0001>
module attributes {stable_mosaic.version = 11 : i64} {
  func.func @_se_block_kernel(%arg0: i32, %arg1: memref<1x64x256xf32, #tpu.memory_space<vmem>>, %arg2: memref<64x4xf32, #tpu.memory_space<vmem>>, %arg3: memref<1x4xf32, #tpu.memory_space<vmem>>, %arg4: memref<4x64xf32, #tpu.memory_space<vmem>>, %arg5: memref<1x64xf32, #tpu.memory_space<vmem>>, %arg6: memref<1x64x256xf32, #tpu.memory_space<vmem>>) attributes {dimension_semantics = [#tpu.dimension_semantics<parallel>], iteration_bounds = array<i64: 2>, scalar_prefetch = 0 : i64, scratch_operands = 0 : i64, tpu.core_type = #tpu.core_type<tc>, window_params = [{transform_indices = @transform_0, window_bounds = array<i64: 1, 64, 256>}, {pipeline_mode = #tpu.pipeline_mode<synchronous>, transform_indices = @transform_1, window_bounds = array<i64: 64, 4>}, {pipeline_mode = #tpu.pipeline_mode<synchronous>, transform_indices = @transform_2, window_bounds = array<i64: 1, 4>}, {pipeline_mode = #tpu.pipeline_mode<synchronous>, transform_indices = @transform_3, window_bounds = array<i64: 4, 64>}, {pipeline_mode = #tpu.pipeline_mode<synchronous>, transform_indices = @transform_4, window_bounds = array<i64: 1, 64>}, {transform_indices = @transform_5, window_bounds = array<i64: 1, 64, 256>}]} {
    %c0 = arith.constant 0 : index
    %c0_0 = arith.constant 0 : index
    %c0_1 = arith.constant 0 : index
    %0 = vector.load %arg1[%c0, %c0_0, %c0_1] : memref<1x64x256xf32, #tpu.memory_space<vmem>>, vector<1x64x256xf32>
    %cst = arith.constant dense<0.000000e+00> : vector<1x64xf32>
    %1 = vector.multi_reduction <add>, %0, %cst [2] : vector<1x64x256xf32> to vector<1x64xf32>
    %cst_2 = arith.constant 3.906250e-03 : f32
    %2 = vector.broadcast %cst_2 : f32 to vector<1x64xf32>
    %3 = arith.mulf %1, %2 : vector<1x64xf32>
    %c0_3 = arith.constant 0 : index
    %c0_4 = arith.constant 0 : index
    %4 = vector.load %arg2[%c0_3, %c0_4] : memref<64x4xf32, #tpu.memory_space<vmem>>, vector<64x4xf32>
    %cst_5 = arith.constant dense<0.000000e+00> : vector<1x4xf32>
    %5 = tpu.matmul %3, %4, %cst_5 {dimension_numbers = #tpu.dot_dimension_numbers<[1], [0], [0], [1], [0, 0, 1, 1], [], []>} : vector<1x64xf32>, vector<64x4xf32>, vector<1x4xf32> -> vector<1x4xf32>
    %c0_6 = arith.constant 0 : index
    %c0_7 = arith.constant 0 : index
    %6 = vector.load %arg3[%c0_6, %c0_7] : memref<1x4xf32, #tpu.memory_space<vmem>>, vector<1x4xf32>
    %7 = arith.addf %5, %6 : vector<1x4xf32>
    %cst_8 = arith.constant 0.000000e+00 : f32
    %8 = vector.broadcast %cst_8 : f32 to vector<1x4xf32>
    %9 = arith.maximumf %7, %8 : vector<1x4xf32>
    %c0_9 = arith.constant 0 : index
    %c0_10 = arith.constant 0 : index
    %10 = vector.load %arg4[%c0_9, %c0_10] : memref<4x64xf32, #tpu.memory_space<vmem>>, vector<4x64xf32>
    %cst_11 = arith.constant dense<0.000000e+00> : vector<1x64xf32>
    %11 = tpu.matmul %9, %10, %cst_11 {dimension_numbers = #tpu.dot_dimension_numbers<[1], [0], [0], [1], [0, 0, 1, 1], [], []>} : vector<1x4xf32>, vector<4x64xf32>, vector<1x64xf32> -> vector<1x64xf32>
    %c0_12 = arith.constant 0 : index
    %c0_13 = arith.constant 0 : index
    %12 = vector.load %arg5[%c0_12, %c0_13] : memref<1x64xf32, #tpu.memory_space<vmem>>, vector<1x64xf32>
    %13 = arith.addf %11, %12 : vector<1x64xf32>
    %cst_14 = arith.constant 0.000000e+00 : f32
    %14 = vector.broadcast %cst_14 : f32 to vector<1x64xf32>
    %15 = arith.subf %14, %13 : vector<1x64xf32>
    %16 = math.exp %15 : vector<1x64xf32>
    %cst_15 = arith.constant 1.000000e+00 : f32
    %17 = vector.broadcast %cst_15 : f32 to vector<1x64xf32>
    %18 = arith.addf %17, %16 : vector<1x64xf32>
    %19 = tpu.reciprocal %18 {approx = true} : vector<1x64xf32> -> vector<1x64xf32>
    %20 = vector.shape_cast %19 : vector<1x64xf32> to vector<1x64x1xf32>
    %21 = vector.broadcast %20 : vector<1x64x1xf32> to vector<1x64x256xf32>
    %22 = arith.mulf %0, %21 : vector<1x64x256xf32>
    %c0_16 = arith.constant 0 : index
    %c0_17 = arith.constant 0 : index
    %c0_18 = arith.constant 0 : index
    %23 = vector.load %arg6[%c0_16, %c0_17, %c0_18] : memref<1x64x256xf32, #tpu.memory_space<vmem>>, vector<1x64x256xf32>
    tpu.vector_store %arg6[%c0_16, %c0_17, %c0_18], %22 {strides = array<i32>} : memref<1x64x256xf32, #tpu.memory_space<vmem>>, vector<1x64x256xf32>,
    return
  }
  func.func @transform_0(%arg0: i32) -> (i32, i32, i32) {
    %c0_i32 = arith.constant 0 : i32
    %c0_i32_0 = arith.constant 0 : i32
    %c0_i32_1 = arith.constant 0 : i32
    return %arg0, %c0_i32, %c0_i32_0 : i32, i32, i32
  }
  func.func @transform_1(%arg0: i32) -> (i32, i32) {
    %c0_i32 = arith.constant 0 : i32
    %c0_i32_0 = arith.constant 0 : i32
    %c0_i32_1 = arith.constant 0 : i32
    return %c0_i32, %c0_i32_0 : i32, i32
  }
  func.func @transform_2(%arg0: i32) -> (i32, i32) {
    %c0_i32 = arith.constant 0 : i32
    %c0_i32_0 = arith.constant 0 : i32
    %c0_i32_1 = arith.constant 0 : i32
    return %c0_i32, %c0_i32_0 : i32, i32
  }
  func.func @transform_3(%arg0: i32) -> (i32, i32) {
    %c0_i32 = arith.constant 0 : i32
    %c0_i32_0 = arith.constant 0 : i32
    %c0_i32_1 = arith.constant 0 : i32
    return %c0_i32, %c0_i32_0 : i32, i32
  }
  func.func @transform_4(%arg0: i32) -> (i32, i32) {
    %c0_i32 = arith.constant 0 : i32
    %c0_i32_0 = arith.constant 0 : i32
    %c0_i32_1 = arith.constant 0 : i32
    return %c0_i32, %c0_i32_0 : i32, i32
  }
  func.func @transform_5(%arg0: i32) -> (i32, i32, i32) {
    %c0_i32 = arith.constant 0 : i32
    %c0_i32_0 = arith.constant 0 : i32
    %c0_i32_1 = arith.constant 0 : i32
    return %arg0, %c0_i32, %c0_i32_0 : i32, i32, i32
  }
}

</mosaic_0001>

<bundles_post_ra>
// kernel: tpu_custom_call.1
= control target key start
LH: loop header
LB: loop body
LE: loop exit
PB: predicated region body
PF: predicated region fallthrough
CT: control target
= control target key end

     0   :  { %10 = vsyncpa [#allocation3], 0  ;;  %s1031_s0 = inlined_call_operand.hbm [shape: f32[2,64,256], index: 0, kind: input, shape index: {}]   ;;  %s1032_s1 = inlined_call_operand.vmem [shape: f32[64,4], index: 1, kind: input, shape index: {}]   ;;  %s1033_s2 = inlined_call_operand.vmem [shape: f32[1,4], index: 2, kind: input, shape index: {}]   ;;  %s1034_s3 = inlined_call_operand.vmem [shape: f32[4,64], index: 3, kind: input, shape index: {}]   ;;  %s1035_s4 = inlined_call_operand.vmem [shape: f32[1,64], index: 4, kind: input, shape index: {}]   ;;  %s1036_s5 = inlined_call_operand.hbm [shape: f32[2,64,256], index: 5, kind: output, shape index: {}]  }
   0x1   :  { %12 = vsyncpa [#allocation3 + $0x1], 0 }
   0x2   :  { %13 = vsyncpa [#allocation4], 0 }
   0x3   :  { %15 = vsyncpa [#allocation4 + $0x1], 0  ;;  %s784_s18 = smov 0   ;;  %s786_s19 = smov 0  }
   0x4   :  { %s788_s20 = smov 0   ;;  %s790_s21 = smov 0  }
   0x5 LB: > { %s805_s22 = sadd.s32 4294967295, %s748_s21   ;;  %s570_s23 = sadd.s32 4294967294, %s748_s21   ;;  %s748_s21 = sphi %s790_s21, %s1046_s21   ;;  %s744_s20 = sphi %s788_s20, %s1045_s20   ;;  %s740_s19 = sphi %s786_s19, %s1044_s19   ;;  %s736_s18 = sphi %s784_s18, %s1043_s18  }
   0x6   : > { %s809_s24 = sadd.s32 1, %s748_s21   ;;  %s28_s25 = sadd.s32 1, %s744_s20 }
   0x7   : > { %s25_s26 = ssub.s32 %s748_s21, %s809_s24  ;;  %p35_p0 = scmp.ne.s32.totalorder %s744_s20, %s740_s19 }
   0x8   : > { %p26_p1 = scmp.eq.s32.totalorder %s25_s26, 0  ;;  %p36_p2 = scmp.eq.s32.totalorder %s748_s21, 0 }
   0x9   : > { %p41_p3 = scmp.ne.s32.totalorder %s740_s19, %s736_s18  ;;  %p42_p4 = scmp.eq.s32.totalorder %s805_s22, 0 }
   0xa   : > { %s821_s27 = scalar_select %p26_p1, %s744_s20, %s28_s25  }
   0xb   : > { %p823_p5 = por %p36_p2, %p35_p0  ;;  %p827_p6 = por %p42_p4, %p41_p3 }
   0xc   : > { %p149_p7 = scmp.eq.s32.totalorder %s805_s22, 1  ;;  %p155_p8 = scmp.eq.s32.totalorder %s570_s23, 1 }
   0xd   : > { %p601_p10 = scmp.lt.s32.totalorder %s748_s21, 2  ;;  %s187_s7 = sand.u32 1, %s744_s20  }
   0xe   : > { %p834_p11 = por %p149_p7, %p35_p0  ;;  %p838_p12 = por %p155_p8, %p41_p3 }
   0xf   : > { %s587_s8 = sshll.u32 %s748_s21, 7  ;;  %s573_s9 = sshll.u32 %s187_s7, 7 }
  0x10   : > { %s196_s12 = scalar_lea.hbm %s1031_s0, %s587_s8  ;;  %s191_s14 = scalar_lea.vmem [#allocation2], %s573_s9 }
  0x11   : > { %s197_s13 = sshll.u32 %s196_s12, 4  ;;  %s199_s15 = sshll.u32 %s191_s14, 4  ;;  %s198_s13 = int_to_ptr.hbm [resolvable:$true] %s197_s13  ;;  %s200_s15 = int_to_ptr.vmem [resolvable:$true] %s199_s15 }
  0x12   : > { %p849_p13 = pnand %p601_p10, %p823_p5  ;;  %p576_p0 = scmp.ge.s32.totalorder %s748_s21, 1 }
  0x13   : > { %p207_p1 = scmp.lt.s32.totalorder %s748_s21, 3  ;;  %s188_s17 = scalar_lea.sflag [#allocation3], %s187_s7 }
  0x14   : > { %s652_s23 = sshra.s32 %s198_s13, 4  ;;  %p656_p3 = pneg %p849_p13  ;;  %s653_s23 = int_to_ptr.hbm [resolvable:$true] %s652_s23 }
  0x15   : > { %s654_s25 = scalar_lea.hbm %s653_s23, 128  ;;  %s659_s28 = scalar_lea.hbm %s1031_s0, 256 }
  0x16   : > { %p655_p2 = scmp.ne.s32.totalorder %s653_s23, %s654_s25  ;;  %p660_p5 = scmp.lt.s32.totalorder %s653_s23, %s1031_s0 }
  0x17   : > { %p661_p8 = scmp.lt.s32.totalorder %s659_s28, %s654_s25 }
  0x18   : > { %p657_p4 = pnand %p656_p3, %p655_p2 }
  0x19   : > { %p662_p10 = por %p661_p8, %p660_p5 }
  0x1a   : > { %p658_p7 = pneg %p657_p4 }
  0x1c   : > { %p663_p9 = pnand %p662_p10, %p658_p7 }
  0x1e   : > { %666 = shalt.err (!%p663_p9)
}
  0x1f   : > { %s750_s7 = smov 256   ;;  %s751_s11 = smov 16  }
  0x20   : > { %596 = dma.hbm_to_vmem [thread:$0]  (!%p849_p13), %s198_s13, 2048, %s200_s15, %s188_s17, %s750_s7, %s750_s7, %s751_s11  }
  0x21   : > { %p208_p2 = pnand %p576_p0, %p207_p1 }
  0x22   : > { %s870_s12 = sand.u32 (!%p208_p2), 1, %s740_s19  }
  0x23   : > { %211 = sbr.rel (%p208_p2) target bundleno = 616 (0x268), region = 40  ;;  %s577_s14 = sshll.u32 (!%p208_p2), %s870_s12, 7 }
  0x24   : > { %s214_s23 = scalar_lea.sflag (!%p208_p2), [#allocation3], %s870_s12  ;;  %s217_s25 = scalar_lea.vmem (!%p208_p2), [#allocation2], %s577_s14 }
  0x28   : > { %727 = dma.done.wait (%p827_p6), %s214_s23, 2048  }
  0x29   : > { %729 = vsyncadd (%p827_p6), %s214_s23, 4294965248  ;;  %v880_v0 = vld [vmem:[%s217_s25] sm:$0xff]  ;;  %v882_v1 = vld [vmem:[%s217_s25 + $0x8] sm:$0xff]  ;;  %v310_v32 = vlaneseq  ;;  %vm315_vm0 = vcmask 130112   ;;  %vm319_vm1 = vcmask 195712   ;;  %vm323_vm2 = vcmask 261312  }
  0x2a   : > { %v884_v2 = vld [vmem:[%s217_s25 + $0x20] sm:$0xff]  ;;  %v261_v3 = vadd.f32 %v882_v1, %v880_v0  ;;  %v888_v4 = vld [vmem:[%s217_s25 + $0x28] sm:$0xff]  ;;  %v898_v9 = vld [vmem:[%s217_s25 + $0x10] sm:$0xff]  ;;  %vm327_vm3 = vcmask 326912   ;;  %vm331_vm4 = vcmask 392512   ;;  %vm335_vm5 = vcmask 458112  }
  0x2b   : > { %v890_v5 = vld [vmem:[%s217_s25 + $0x40] sm:$0xff]  ;;  %v892_v6 = vld [vmem:[%s217_s25 + $0x48] sm:$0xff]  ;;  %v267_v7 = vadd.f32 %v888_v4, %v884_v2  ;;  %v900_v10 = vld [vmem:[%s217_s25 + $0x18] sm:$0xff]  ;;  %v311_v36 = vand.u32 127, %v310_v32  ;;  %vm339_vm6 = vcmask 523712   ;;  %vm341_vm7 = vcmask 523264  }
  0x2c   : > { %v273_v8 = vadd.f32 %v892_v6, %v890_v5  ;;  %262 = vadd.xlane.f32.xlu0 %v261_v3  ;;  %v902_v11 = vld [vmem:[%s217_s25 + $0x30] sm:$0xff]  ;;  %v904_v12 = vld [vmem:[%s217_s25 + $0x38] sm:$0xff]  ;;  %v264_v15 = vadd.f32 %v900_v10, %v898_v9  ;;  %v916_v18 = vld [vmem:[%s217_s25 + $0x60] sm:$0xff]  ;;  %vm371_vm8 = vcmask 1043456   ;;  %vm367_vm9 = vcmask 31744   ;;  %s965_s9 = scalar_lea.vmem [#allocation5], %s577_s14 }
  0x2d   : > { %268 = vadd.xlane.f32.xlu1 %v267_v7  ;;  %v906_v13 = vld [vmem:[%s217_s25 + $0x50] sm:$0xff]  ;;  %v908_v14 = vld [vmem:[%s217_s25 + $0x58] sm:$0xff]  ;;  %v270_v16 = vadd.f32 %v904_v12, %v902_v11  ;;  %v918_v19 = vld [vmem:[%s217_s25 + $0x68] sm:$0xff]  ;;  %v313_v38 = vadd.s32 4294967288, %v311_v36  ;;  %v317_v39 = vadd.s32 4294967280, %v311_v36  ;;  %v321_v42 = vadd.s32 4294967272, %v311_v36 }
  0x2e   : > { %274 = vadd.xlane.f32.xlu2 %v273_v8  ;;  %v276_v17 = vadd.f32 %v908_v14, %v906_v13  ;;  %v920_v20 = vld [vmem:[%s217_s25 + $0x70] sm:$0xff]  ;;  %v922_v21 = vld [vmem:[%s217_s25 + $0x78] sm:$0xff]  ;;  %v279_v22 = vadd.f32 %v918_v19, %v916_v18  ;;  %v298_v26 = vld [vmem:[%s1032_s1 + $0x28] sm:$0xff]  ;;  %v325_v46 = vadd.s32 4294967264, %v311_v36  ;;  %v329_v53 = vadd.s32 4294967256, %v311_v36  ;;  %s588_s14 = sshll.u32 %s805_s22, 7 }
  0x2f   : > { %v282_v23 = vadd.f32 %v922_v21, %v920_v20  ;;  %v300_v24 = vld [vmem:[%s1032_s1 + $0x38] sm:$0xff]  ;;  %v299_v25 = vld [vmem:[%s1032_s1 + $0x30] sm:$0xff]  ;;  %v297_v27 = vld [vmem:[%s1032_s1 + $0x20] sm:$0xff]  ;;  %v333_v59 = vadd.s32 4294967248, %v311_v36  ;;  %v337_v62 = vadd.s32 4294967240, %v311_v36  ;;  %s493_s11 = scalar_lea.hbm %s1036_s5, %s588_s14  ;;  %s494_s23 = sshll.u32 %s965_s9, 4  ;;  %s495_s23 = int_to_ptr.vmem [resolvable:$true] %s494_s23 }
  0x30   : > { %352 = vmatpush.msra.mxu0 %v300_v24  ;;  %v296_v28 = vld [vmem:[%s1032_s1 + $0x18] sm:$0xff]  ;;  %v295_v29 = vld [vmem:[%s1032_s1 + $0x10] sm:$0xff]  ;;  %v294_v30 = vld [vmem:[%s1032_s1 + $0x8] sm:$0xff]  ;;  %s496_s25 = sshll.u32 %s493_s11, 4  ;;  %s482_s22 = scalar_lea.sflag [#allocation4], %s870_s12  ;;  %s497_s25 = int_to_ptr.hbm [resolvable:$true] %s496_s25 }
  0x31   : > { %v293_v31 = vld [vmem:[%s1032_s1] sm:$0xff]  ;;  %s696_s29 = sshra.s32 %s497_s25, 4  ;;  %s702_s17 = scalar_lea.hbm %s1036_s5, 256  ;;  %s697_s29 = int_to_ptr.hbm [resolvable:$true] %s696_s29 }
  0x32   : > { %353 = vmatpush.msra.mxu0 %v299_v25  ;;  %v365_v24 = vld [vmem:[%s1034_s3] sm:$0xf]  ;;  %s698_s13 = scalar_lea.hbm %s697_s29, 128  ;;  %p703_p0 = scmp.lt.s32.totalorder %s697_s29, %s1036_s5 }
  0x33   : > { %580 = vmatpush.msk.msra.mxu1 %vm371_vm8, %v365_v24  ;;  %v301_v25 = vld [vmem:[%s1033_s2] sm:$0x1]  ;;  %p699_p6 = scmp.ne.s32.totalorder %s697_s29, %s698_s13  ;;  %p704_p1 = scmp.lt.s32.totalorder %s702_s17, %s698_s13 }
  0x34   : > { %265 = vadd.xlane.f32.xlu0 %v264_v15  ;;  %354 = vmatpush.msra.mxu0 %v298_v26 }
  0x35   : > { %271 = vadd.xlane.f32.xlu1 %v270_v16  ;;  %p700_p9 = pnand %p699_p6, %p834_p11  ;;  %p705_p3 = por %p704_p1, %p703_p0 }
  0x36   : > { %277 = vadd.xlane.f32.xlu2 %v276_v17  ;;  %355 = vmatpush.msra.mxu0 %v297_v27 }
  0x37   : > { %p701_p13 = pneg %p700_p9 }
  0x38   : > { %356 = vmatpush.msra.mxu0 %v296_v28 }
  0x39   : > { %p706_p4 = pnand %p705_p3, %p701_p13 }
  0x3a   : > { %357 = vmatpush.msra.mxu0 %v295_v29  ;;  %v402_v29 = vshrl.u32 %v310_v32, 7 }
  0x3c   : > { %280 = vadd.xlane.f32.xlu0 %v279_v22  ;;  %358 = vmatpush.msra.mxu0 %v294_v30  ;;  %v415_v30 = vadd.s32 16, %v402_v29  ;;  %v433_v32 = vadd.s32 40, %v402_v29 }
  0x3d   : > { %283 = vadd.xlane.f32.xlu1 %v282_v23  ;;  %639 = vset.pattern.permute.xlu2 %v402_v29 }
  0x3e   : > { %359 = vmatpush.msra.mxu0 %v293_v31  ;;  %v409_v31 = vadd.s32 8, %v402_v29  ;;  %641 = vset.pattern.permute.xlu1 %v415_v30 }
  0x40   : > { %640 = vset.pattern.permute.xlu0 %v409_v31 }
  0x9f   : > { %v263_v33 = vpop.xlane.xlu0 %262 }
  0xa0   : > { %v269_v34 = vpop.xlane.xlu1 %268  ;;  %v285_v37 = vmul.f32 0.00390625, %v263_v33  ;;  %v366_v33 = vld [vmem:[%s1035_s4] sm:$0x1] }
  0xa1   : > { %v275_v35 = vpop.xlane.xlu2 %274  ;;  %v287_v40 = vmul.f32 0.00390625, %v269_v34 }
  0xa2   : > { %v312_v48 = vperm.slane %v285_v37, %v311_v36  ;;  %v289_v49 = vmul.f32 0.00390625, %v275_v35 }
  0xa3   : > { %v318_v51 = vperm.slane %v287_v40, %v317_v39 }
  0xa4   : > { %v326_v57 = vperm.slane %v289_v49, %v325_v46 }
  0xa7   : > { %v266_v41 = vpop.xlane.xlu0 %265 }
  0xa8   : > { %v286_v43 = vmul.f32 0.00390625, %v266_v41  ;;  %v272_v44 = vpop.xlane.xlu1 %271 }
  0xa9   : > { %v278_v45 = vpop.xlane.xlu2 %277  ;;  %v288_v47 = vmul.f32 0.00390625, %v272_v44  ;;  %v427_v44 = vadd.s32 32, %v402_v29 }
  0xaa   : > { %v314_v50 = vperm.slane %v286_v43, %v313_v38  ;;  %v290_v54 = vmul.f32 0.00390625, %v278_v45  ;;  %v445_v43 = vadd.s32 56, %v402_v29  ;;  %v439_v45 = vadd.s32 48, %v402_v29 }
  0xab   : > { %v322_v52 = vperm.slane %v288_v47, %v321_v42  ;;  %v421_v42 = vadd.s32 24, %v402_v29 }
  0xac   : > { %v316_v55 = vsel %vm315_vm0, %v314_v50, %v312_v48  ;;  %v330_v60 = vperm.slane %v290_v54, %v329_v53 }
  0xad   : > { %v320_v56 = vsel %vm319_vm1, %v318_v51, %v316_v55 }
  0xae   : > { %v324_v58 = vsel %vm323_vm2, %v322_v52, %v320_v56 }
  0xaf   : > { %v281_v61 = vpop.xlane.xlu0 %280  ;;  %v328_v7 = vsel %vm327_vm3, %v326_v57, %v324_v58 }
  0xb0   : > { %v291_v63 = vmul.f32 0.00390625, %v281_v61  ;;  %v284_v3 = vpop.xlane.xlu1 %283  ;;  %v332_v17 = vsel %vm331_vm4, %v330_v60, %v328_v7 }
  0xb1   : > { %v292_v8 = vmul.f32 0.00390625, %v284_v3 }
  0xb2   : > { %v334_v15 = vperm.slane %v291_v63, %v333_v59 }
  0xb3   : > { %v338_v16 = vperm.slane %v292_v8, %v337_v62 }
  0xb4   : > { %v336_v22 = vsel %vm335_vm5, %v334_v15, %v332_v17 }
  0xb5   : > { %v340_v23 = vsel %vm339_vm6, %v338_v16, %v336_v22 }
  0xb6   : > { %579 = vmatmul.msk.f32.vlgmr.msra.gmra.mxu0 %vm341_vm7, %v340_v23 }
 0x133   : > { %v361_v26 = vpop.f32.mrf.mxu0 }
 0x134   : > { %v362_v27 = vadd.f32 %v361_v26, %v301_v25 }
 0x136   : > { %v364_v28 = vmax.f32 %v362_v27, 0.0 }
 0x138   : > { %581 = vmatmul.msk.f32.vlgmr.msra.gmra.mxu1 %vm367_vm9, %v364_v28 }
 0x1b5   : > { %v392_v34 = vpop.f32.mrf.mxu1 }
 0x1b6   : > { %v393_v35 = vadd.f32 %v392_v34, %v366_v33 }
 0x1b8   : > { %v395_v36 = vsub.f32 0.0, %v393_v35 }
 0x1ba   : > { %v396_v37 = vmul.f32 1.442695, %v395_v36 }
 0x1bc   : > { %648 = vpow2.f32 %v396_v37 }
 0x1c2   : > { %v649_v38 = vpop.eup %648 }
 0x1c3   : > { %v398_v39 = vadd.f32 1.0, %v649_v38 }
 0x1c5   : > { %650 = vrcp.f32 %v398_v39 }
 0x1cb   : > { %v651_v40 = vpop.eup %650 }
 0x1cc   : > { %v400_v41 = vperm.slane %v651_v40, 0 }
 0x1ce   : > { %417 = vperm.xlu1 %641, %v400_v41   ;;  %411 = vperm.xlu0 %640, %v400_v41  }
 0x1cf   : > { %405 = vperm.xlu2 %639, %v400_v41  }
 0x1d6   : > { %644 = vset.pattern.permute.xlu1 %v433_v32  ;;  %647 = vset.pattern.permute.xlu0 %v445_v43 }
 0x1d7   : > { %642 = vset.pattern.permute.xlu2 %v421_v42 }
 0x1de   : > { %435 = vperm.xlu1 %644, %v400_v41  }
 0x1df   : > { %423 = vperm.xlu2 %642, %v400_v41  }
 0x1e6   : > { %646 = vset.pattern.permute.xlu1 %v445_v43 }
 0x1e7   : > { %643 = vset.pattern.permute.xlu2 %v427_v44 }
 0x1ee   : > { %447 = vperm.xlu1 %646, %v400_v41  }
 0x1ef   : > { %429 = vperm.xlu2 %643, %v400_v41  }
 0x1f7   : > { %645 = vset.pattern.permute.xlu2 %v439_v45 }
 0x1ff   : > { %441 = vperm.xlu2 %645, %v400_v41  }
 0x229   : > { %v406_v46 = vpop.permute.xlu2 %405 }
 0x22a   : > { %v449_v47 = vmul.f32 %v406_v46, %v880_v0  ;;  %v450_v48 = vmul.f32 %v406_v46, %v882_v1 }
 0x22c   : > { %465 = vst [vmem:[%s965_s9] sm:$0xff] %v449_v47 }
 0x22d   : > { %466 = vst [vmem:[%s965_s9 + $0x8] sm:$0xff] %v450_v48 }
 0x239   : > { %v424_v49 = vpop.permute.xlu2 %423 }
 0x23a   : > { %v455_v50 = vmul.f32 %v424_v49, %v902_v11  ;;  %v456_v0 = vmul.f32 %v424_v49, %v904_v12 }
 0x23c   : > { %471 = vst [vmem:[%s965_s9 + $0x30] sm:$0xff] %v455_v50 }
 0x23d   : > { %472 = vst [vmem:[%s965_s9 + $0x38] sm:$0xff] %v456_v0 }
 0x240   : > { %v418_v1 = vpop.permute.xlu1 %417  ;;  %v412_v51 = vpop.permute.xlu0 %411 }
 0x241   : > { %v453_v52 = vmul.f32 %v418_v1, %v884_v2  ;;  %v454_v53 = vmul.f32 %v418_v1, %v888_v4  ;;  %v451_v54 = vmul.f32 %v412_v51, %v898_v9  ;;  %v452_v55 = vmul.f32 %v412_v51, %v900_v10 }
 0x243   : > { %469 = vst [vmem:[%s965_s9 + $0x20] sm:$0xff] %v453_v52 }
 0x244   : > { %470 = vst [vmem:[%s965_s9 + $0x28] sm:$0xff] %v454_v53 }
 0x245   : > { %467 = vst [vmem:[%s965_s9 + $0x10] sm:$0xff] %v451_v54 }
 0x246   : > { %468 = vst [vmem:[%s965_s9 + $0x18] sm:$0xff] %v452_v55 }
 0x249   : > { %v430_v11 = vpop.permute.xlu2 %429 }
 0x24a   : > { %v457_v12 = vmul.f32 %v430_v11, %v890_v5  ;;  %v458_v2 = vmul.f32 %v430_v11, %v892_v6 }
 0x24c   : > { %473 = vst [vmem:[%s965_s9 + $0x40] sm:$0xff] %v457_v12 }
 0x24d   : > { %474 = vst [vmem:[%s965_s9 + $0x48] sm:$0xff] %v458_v2 }
 0x250   : > { %v436_v4 = vpop.permute.xlu1 %435 }
 0x251   : > { %v459_v9 = vmul.f32 %v436_v4, %v906_v13  ;;  %v460_v56 = vmul.f32 %v436_v4, %v908_v14 }
 0x253   : > { %475 = vst [vmem:[%s965_s9 + $0x50] sm:$0xff] %v459_v9 }
 0x254   : > { %476 = vst [vmem:[%s965_s9 + $0x58] sm:$0xff] %v460_v56 }
 0x259   : > { %v442_v10 = vpop.permute.xlu2 %441 }
 0x25a   : > { %v461_v57 = vmul.f32 %v442_v10, %v916_v18  ;;  %v462_v5 = vmul.f32 %v442_v10, %v918_v19 }
 0x25c   : > { %477 = vst [vmem:[%s965_s9 + $0x60] sm:$0xff] %v461_v57 }
 0x25d   : > { %478 = vst [vmem:[%s965_s9 + $0x68] sm:$0xff] %v462_v5 }
 0x260   : > { %v448_v6 = vpop.permute.xlu1 %447 }
 0x261   : > { %v463_v13 = vmul.f32 %v448_v6, %v920_v20  ;;  %v464_v14 = vmul.f32 %v448_v6, %v922_v21 }
 0x263   : > { %479 = vst [vmem:[%s965_s9 + $0x70] sm:$0xff] %v463_v13 }
 0x264   : > { %480 = vst [vmem:[%s965_s9 + $0x78] sm:$0xff] %v464_v14 }
 0x265   : > { %709 = shalt.err (!%p706_p4)
}
 0x266   : > { %s752_s12 = smov 256   ;;  %s753_s28 = smov 16  }
 0x267   : > { %591 = dma.vmem_to_hbm [thread:$0]  (%p834_p11), %s495_s23, 2048, %s497_s25, %s482_s22, %s752_s12, %s752_s12, %s753_s28  }
 0x268 PF: > { %s511_s9 = sand.u32 1, %s736_s18   ;;  %p1042_p7 = scmp.ge.s32.totalorder %s748_s21, 2 }
 0x269   : > { %s512_s14 = scalar_lea.sflag [#allocation4], %s511_s9 }
 0x26a   : > { %p598_p5 = pnand %p1042_p7, %p838_p12 }
 0x26c   : > { %p599_p8 = pneg %p598_p5 }
 0x26e   : > { %731 = dma.done.wait (%p599_p8), %s512_s14, 2048  }
 0x26f   : > { %733 = vsyncadd (%p599_p8), %s512_s14, 4294965248  ;;  %p18_p10 = scmp.ge.s32.totalorder %s809_s24, 4   ;;  %s1043_s18 = smov %s740_s19 }
 0x270   : > { %s1044_s19 = smov %s744_s20  ;;  %s1045_s20 = smov %s821_s27 }
 0x271   : > { %s1046_s21 = smov %s809_s24  ;;  %20 = sbr.rel (!%p18_p10) target bundleno = 5 (0x5), region = 85 }
 0x276   :  { %518 = vsyncpa [#allocation3], 1 }
 0x277   :  { %520 = vsyncpa [#allocation3 + $0x1], 1 }
 0x278   :  { %521 = vsyncpa [#allocation4], 1 }
 0x279   :  { %523 = vsyncpa [#allocation4 + $0x1], 1 }

</bundles_post_ra>
